<compile_context>
chip_gen: v7x
topology: tpu7x:2x2x1
jax: 0.10.0
libtpu: 0.0.40
codegen_flags: <defaults>
</compile_context>

<pallas_src>
import jax
import jax.numpy as jnp
from jax.experimental import pallas as pl
from jax.experimental.pallas import tpu as pltpu

_LANE = 128
_SUBLANE = 8
# Tile budget sized for v7x (64 MiB physical VMEM, keep headroom); v5e/v6e have 128 MiB.
_VMEM_TILE_BUDGET = 44 * 1024 * 1024
# Raise the scoped VMEM limit (defaults: 16 MiB v5e / 32 MiB v6e,v7x) so the larger
# batch tiles stay double-buffered instead of being clamped.
_VMEM_LIMIT_BYTES = 64 * 1024 * 1024


def _round_up(x, m):
    return ((x + m - 1) // m) * m


def _categorical_embedder_kernel(x_ref, w_ref, b_ref, o_ref):
    # x_ref: (TM, In) raw labels        w_ref: (In, Hp) lane-dense transposed weight
    # b_ref: (1, Hp)                    o_ref: (TM, Hp)
    #
    # NOTE: on the ragged last batch tile the out-of-bounds rows of x_ref hold undefined
    # data; they flow through the matmul but are masked on the output store. Rows are
    # independent here — do NOT add any cross-row reduction without masking them first.
    x = x_ref[...].astype(jnp.float32)                 # labels.float(): in-kernel, VPU-cheap
    y = jax.lax.dot_general(
        x, w_ref[...],
        dimension_numbers=(((1,), (0,)), ((), ())),    # [TM,In] @ [In,Hp]
        preferred_element_type=jnp.float32,
        precision=jax.lax.Precision.HIGHEST,           # true-f32 parity; K is tiny, cost ~0
    )
    o_ref[...] = (y + b_ref[...]).astype(o_ref.dtype)


def _choose_tm(In, Hp, label_itemsize, out_itemsize, tm_req):
    """Largest batch tile (multiple of 8, <= tm_req) that fits the VMEM budget.

    Budget accounting (per perf review): Pallas double-buffers every input/output block,
    including the constant-index resident weight/bias, so count them 2x.
    """
    fixed = 2 * (In * Hp * 4) + 2 * (Hp * 4)                     # weight + bias (x2 buffers)
    per_row = 2 * (In * label_itemsize) + 2 * (Hp * out_itemsize)  # label + out tiles (x2)
    avail = _VMEM_TILE_BUDGET - fixed
    if avail < per_row * _SUBLANE:
        cap = _SUBLANE
    else:
        cap = max(_SUBLANE, (avail // per_row) // _SUBLANE * _SUBLANE)
    tm = max(_SUBLANE, (tm_req // _SUBLANE) * _SUBLANE)
    return int(min(tm, cap))


def categorical_embedder(labels, weight, bias, *, tm=512, out_dtype=jnp.float32):
    """labels: (B, input_size), any real/int dtype (raw, uncast)
       weight: (hidden_size, input_size)  -- native PyTorch nn.Linear layout
       bias:   (hidden_size,)
       returns (B, hidden_size) in out_dtype (default float32)
    """
    B, In = labels.shape
    H, In_w = weight.shape
    assert In == In_w, "weight/labels feature-size mismatch"

    # Lane-dense output: pad hidden dim to a multiple of 128 (free when H % 128 == 0).
    Hp = _round_up(H, _LANE)

    # One-time wrapper transpose of the small, *resident* weight -> (In, Hp), lane-dense.
    # ("no wrapper transpose" only matters for large streamed operands.)
    w_t = jnp.transpose(weight)                 # (In, H)
    b2 = bias.reshape(1, H)
    if Hp != H:
        w_t = jnp.pad(w_t, ((0, 0), (0, Hp - H)))
        b2 = jnp.pad(b2, ((0, 0), (0, Hp - H)))

    out_dtype = jnp.dtype(out_dtype)
    TM = _choose_tm(In, Hp, jnp.dtype(labels.dtype).itemsize, out_dtype.itemsize, tm)

    if B <= TM:
        if B >= 64:
            # Force >= 2 batch tiles so both v7x TensorCores get work via the "parallel"
            # grid axis; costs ~0.35us of grid overhead on single-TC v5e/v6e.
            TM = _round_up(pl.cdiv(B, 2), _SUBLANE)
        else:
            TM = B  # single block; block_shape == full array extent is always legal
    grid_b = pl.cdiv(B, TM)   # ragged last block is masked by Pallas on store

    out = pl.pallas_call(
        _categorical_embedder_kernel,
        out_shape=jax.ShapeDtypeStruct((B, Hp), out_dtype),
        grid=(grid_b,),
        in_specs=[
            pl.BlockSpec((TM, In), lambda i: (i, 0)),   # labels: tiled over batch
            pl.BlockSpec((In, Hp), lambda i: (0, 0)),   # weight: resident across grid
            pl.BlockSpec((1, Hp), lambda i: (0, 0)),    # bias:   resident across grid
        ],
        out_specs=pl.BlockSpec((TM, Hp), lambda i: (i, 0)),
        compiler_params=pltpu.CompilerParams(
            dimension_semantics=("parallel",),          # shard batch tiles across TCs
            vmem_limit_bytes=_VMEM_LIMIT_BYTES,
        ),
    )(labels, w_t, b2)

    if Hp != H:
        out = out[:, :H]        # drop lane padding (only taken when H % 128 != 0)
    # embeddings.view(B, hidden_size) — already (B, H).
    return out


if __name__ == "__main__":
    key = jax.random.PRNGKey(0)
    k1, k2, k3, k4, k5 = jax.random.split(key, 5)

    B, input_size, hidden_size = 8, 16, 32

    # Deterministic synthetic categorical labels (integer codes), passed RAW (no pre-cast).
    labels = jax.random.randint(k1, (B, input_size), 0, 5).astype(jnp.int32)

    # nn.Linear(input_size, hidden_size) parameters in native PyTorch layout.
    weight = jax.random.normal(k2, (hidden_size, input_size), dtype=jnp.float32) * 0.02
    bias = jax.random.normal(k3, (hidden_size,), dtype=jnp.float32) * 0.01

    # 1) Single-block path.
    out = jax.block_until_ready(categorical_embedder(labels, weight, bias))
    ref = labels.astype(jnp.float32) @ weight.T + bias
    assert out.shape == (B, hidden_size)
    assert jnp.allclose(out, ref, atol=1e-5), "mismatch vs reference (single-block path)"

    # 2) Tiled multi-block path (grid > 1) with a ragged last tile.
    B2 = 40
    labels2 = jax.random.randint(k4, (B2, input_size), 0, 5).astype(jnp.int32)
    out2 = jax.block_until_ready(categorical_embedder(labels2, weight, bias, tm=8))
    ref2 = labels2.astype(jnp.float32) @ weight.T + bias
    assert out2.shape == (B2, hidden_size)
    assert jnp.allclose(out2, ref2, atol=1e-5), "mismatch vs reference (tiled path)"

    # 3) Forced >=2-tile split path (B >= 64 single-block request -> 2 parallel tiles).
    B3 = 64
    labels3 = jax.random.randint(k5, (B3, input_size), 0, 5).astype(jnp.int32)
    out3 = jax.block_until_ready(categorical_embedder(labels3, weight, bias))
    ref3 = labels3.astype(jnp.float32) @ weight.T + bias
    assert out3.shape == (B3, hidden_size)
    assert jnp.allclose(out3, ref3, atol=1e-5), "mismatch vs reference (megacore split path)"

    print("KERNEL_OK")
</pallas_src>

<mosaic_0001>
module attributes {stable_mosaic.version = 11 : i64} {
  func.func @_categorical_embedder_kernel(%arg0: i32, %arg1: memref<8x16xi32, #tpu.memory_space<vmem>>, %arg2: memref<16x128xf32, #tpu.memory_space<vmem>>, %arg3: memref<1x128xf32, #tpu.memory_space<vmem>>, %arg4: memref<8x128xf32, #tpu.memory_space<vmem>>) attributes {dimension_semantics = [#tpu.dimension_semantics<parallel>], iteration_bounds = array<i64: 1>, scalar_prefetch = 0 : i64, scratch_operands = 0 : i64, tpu.core_type = #tpu.core_type<tc>, window_params = [{transform_indices = @transform_0, window_bounds = array<i64: 8, 16>}, {pipeline_mode = #tpu.pipeline_mode<synchronous>, transform_indices = @transform_1, window_bounds = array<i64: 16, 128>}, {pipeline_mode = #tpu.pipeline_mode<synchronous>, transform_indices = @transform_2, window_bounds = array<i64: 1, 128>}, {transform_indices = @transform_3, window_bounds = array<i64: 8, 128>}]} {
    %c0 = arith.constant 0 : index
    %c0_0 = arith.constant 0 : index
    %0 = vector.load %arg1[%c0, %c0_0] : memref<8x16xi32, #tpu.memory_space<vmem>>, vector<8x16xi32>
    %1 = arith.sitofp %0 : vector<8x16xi32> to vector<8x16xf32>
    %c0_1 = arith.constant 0 : index
    %c0_2 = arith.constant 0 : index
    %2 = vector.load %arg2[%c0_1, %c0_2] : memref<16x128xf32, #tpu.memory_space<vmem>>, vector<16x128xf32>
    %cst = arith.constant dense<0.000000e+00> : vector<8x128xf32>
    %3 = tpu.matmul %1, %2, %cst {dimension_numbers = #tpu.dot_dimension_numbers<[1], [0], [0], [1], [0, 0, 1, 1], [], []>, precision = #tpu.contract_precision<fp32>} : vector<8x16xf32>, vector<16x128xf32>, vector<8x128xf32> -> vector<8x128xf32>
    %c0_3 = arith.constant 0 : index
    %c0_4 = arith.constant 0 : index
    %4 = vector.load %arg3[%c0_3, %c0_4] : memref<1x128xf32, #tpu.memory_space<vmem>>, vector<1x128xf32>
    %5 = vector.broadcast %4 : vector<1x128xf32> to vector<8x128xf32>
    %6 = arith.addf %3, %5 : vector<8x128xf32>
    %c0_5 = arith.constant 0 : index
    %c0_6 = arith.constant 0 : index
    %7 = vector.load %arg4[%c0_5, %c0_6] : memref<8x128xf32, #tpu.memory_space<vmem>>, vector<8x128xf32>
    tpu.vector_store %arg4[%c0_5, %c0_6], %6 {strides = array<i32>} : memref<8x128xf32, #tpu.memory_space<vmem>>, vector<8x128xf32>,
    return
  }
  func.func @transform_0(%arg0: i32) -> (i32, i32) {
    %c0_i32 = arith.constant 0 : i32
    %c0_i32_0 = arith.constant 0 : i32
    return %arg0, %c0_i32 : i32, i32
  }
  func.func @transform_1(%arg0: i32) -> (i32, i32) {
    %c0_i32 = arith.constant 0 : i32
    %c0_i32_0 = arith.constant 0 : i32
    %c0_i32_1 = arith.constant 0 : i32
    return %c0_i32, %c0_i32_0 : i32, i32
  }
  func.func @transform_2(%arg0: i32) -> (i32, i32) {
    %c0_i32 = arith.constant 0 : i32
    %c0_i32_0 = arith.constant 0 : i32
    %c0_i32_1 = arith.constant 0 : i32
    return %c0_i32, %c0_i32_0 : i32, i32
  }
  func.func @transform_3(%arg0: i32) -> (i32, i32) {
    %c0_i32 = arith.constant 0 : i32
    %c0_i32_0 = arith.constant 0 : i32
    return %arg0, %c0_i32 : i32, i32
  }
}

</mosaic_0001>

<bundles_post_ra>
// kernel: tpu_custom_call.1
= control target key start
LH: loop header
LB: loop body
LE: loop exit
PB: predicated region body
PF: predicated region fallthrough
CT: control target
= control target key end

     0   :  { %8 = vsyncpa [#allocation3], 0  ;;  %s818_s0 = inlined_call_operand.hbm [shape: s32[8,16], index: 0, kind: input, shape index: {}]   ;;  %s819_s1 = inlined_call_operand.hbm [shape: f32[16,128], index: 1, kind: input, shape index: {}]   ;;  %s820_s2 = inlined_call_operand.hbm [shape: f32[1,128], index: 2, kind: input, shape index: {}]   ;;  %s821_s3 = inlined_call_operand.hbm [shape: f32[8,128], index: 3, kind: output, shape index: {}]  }
   0x1   :  { %9 = vsyncpa [#allocation6], 0 }
   0x2   :  { %10 = vsyncpa [#allocation4], 0  ;;  %s735_s12 = smov [#allocation5]   ;;  %s641_s16 = scalar_lea.hbm %s819_s1, 256 }
   0x3   :  { %s26_s13 = sshll.u32 %s735_s12, 4  ;;  %p642_p0 = scmp.ne.s32.totalorder %s819_s1, %s641_s16  ;;  %s27_s13 = int_to_ptr.vmem [resolvable:$true] %s26_s13 }
   0x4   :  { %p645_p1 = scmp.lt.u32.totalorder %s641_s16, %s819_s1 }
   0x6   :  { %p647_p2 = pnand %p645_p1, %p642_p0 }
   0x8   :  { %650 = shalt.err (!%p647_p2)
}
   0x9   :  { %s651_s21 = scalar_lea.vmem %s27_s13, 256  ;;  %p656_p4 = scmp.lt.s32.totalorder %s27_s13, %s27_s13 }
   0xa   :  { %p652_p3 = scmp.ne.s32.totalorder %s27_s13, %s651_s21  ;;  %p657_p5 = scmp.lt.s32.totalorder %s651_s21, %s651_s21 }
   0xc   :  { %p658_p6 = por %p657_p5, %p656_p4 }
   0xe   :  { %p659_p7 = pnand %p658_p6, %p652_p3 }
  0x10   :  { %662 = shalt.err (!%p659_p7)
}
  0x11   :  { %s736_s22 = smov 128   ;;  %s737_s23 = smov 8  }
  0x12   :  { %32 = dma.hbm_to_vmem [thread:$0]  %s819_s1, 256, %s27_s13, [#allocation6], %s736_s22, %s736_s22, %s737_s23  }
  0x13   :  { %s738_s26 = smov [#allocation2]   ;;  %s739_s28 = smov [#allocation7]  }
  0x14   :  { %s17_s27 = sshll.u32 %s738_s26, 4  ;;  %s39_s29 = sshll.u32 %s739_s28, 4  ;;  %s18_s27 = int_to_ptr.vmem [resolvable:$true] %s17_s27  ;;  %s40_s29 = int_to_ptr.vmem [resolvable:$true] %s39_s29 }
  0x15   :  { %s663_s5 = scalar_lea.hbm %s818_s0, 128 }
  0x16   :  { %p664_p8 = scmp.ne.s32.totalorder %s818_s0, %s663_s5  ;;  %p667_p9 = scmp.lt.u32.totalorder %s663_s5, %s818_s0 }
  0x18   :  { %p669_p10 = pnand %p667_p9, %p664_p8 }
  0x1a   :  { %672 = shalt.err (!%p669_p10)
}
  0x1b   :  { %s673_s1 = scalar_lea.vmem %s18_s27, 128  ;;  %p678_p12 = scmp.lt.s32.totalorder %s18_s27, %s18_s27 }
  0x1c   :  { %p674_p11 = scmp.ne.s32.totalorder %s18_s27, %s673_s1  ;;  %p679_p13 = scmp.lt.s32.totalorder %s673_s1, %s673_s1 }
  0x1e   :  { %p680_p0 = por %p679_p13, %p678_p12 }
  0x20   :  { %p681_p1 = pnand %p680_p0, %p674_p11 }
  0x22   :  { %684 = shalt.err (!%p681_p1)
}
  0x23   :  { %20 = dma.hbm_to_vmem [thread:$0]  %s818_s0, 128, %s18_s27, [#allocation3]  }
  0x24   :  { %s685_s14 = scalar_lea.hbm %s820_s2, 16 }
  0x25   :  { %p686_p2 = scmp.ne.s32.totalorder %s820_s2, %s685_s14  ;;  %p689_p3 = scmp.lt.u32.totalorder %s685_s14, %s820_s2 }
  0x27   :  { %p691_p4 = pnand %p689_p3, %p686_p2 }
  0x29   :  { %694 = shalt.err (!%p691_p4)
}
  0x2a   :  { %s695_s19 = scalar_lea.vmem %s40_s29, 16  ;;  %s699_s20 = scalar_lea.vmem %s40_s29, 32 }
  0x2b   :  { %p696_p5 = scmp.ne.s32.totalorder %s40_s29, %s695_s19  ;;  %p700_p6 = scmp.lt.s32.totalorder %s40_s29, %s40_s29 }
  0x2c   :  { %p701_p7 = scmp.lt.s32.totalorder %s699_s20, %s695_s19 }
  0x2e   :  { %p702_p8 = por %p701_p7, %p700_p6 }
  0x30   :  { %p703_p9 = pnand %p702_p8, %p696_p5 }
  0x32   :  { %706 = shalt.err (!%p703_p9)
}
  0x33   :  { %42 = dma.hbm_to_vmem [thread:$0]  %s820_s2, 16, %s40_s29, [#allocation6]  }
  0x34   :  { %729 = dma.done.wait [#allocation3], 128  }
  0x35   :  { %730 = vsyncadd [#allocation3], 4294967168 }
  0x36   :  { %731 = dma.done.wait [#allocation6], 272  }
  0x37   :  { %732 = vsyncadd [#allocation6], 4294967024  ;;  %v740_v0 = vmov 0.0|0.0   ;;  %vm741_vm0 = vmmov 0   ;;  %v742_v1 = vmov 0.0   ;;  %v54_v2 = vld [vmem:[#allocation5] sm:$0xff] }
  0x38   :  { %613 = vmatprep.subr.bf16.mxu0 %v740_v0  ;;  %604 = vmatprep.subr.bf16.mxu1 %v740_v0  ;;  %v55_v3 = vld [vmem:[#allocation5 + $0x8] sm:$0xff]  ;;  %v52_v4 = vld [vmem:[#allocation2] sm:$0xff]  ;;  %vm63_vm1 = vcmask 130048   ;;  %v68_v5 = vand.u32 4294901760, %v54_v2  ;;  %v543_v28 = vld [vmem:[#allocation7] ss:$0 sm:$0xff] }
  0x39   :  { %587 = vmatprep.mubr.msk.f32.mxu0 %vm741_vm0, %v742_v1  ;;  %566 = vmatprep.mubr.msk.f32.mxu1 %vm741_vm0, %v742_v1  ;;  %v71_v6 = vand.u32 4294901760, %v55_v3  ;;  %v53_v7 = vcvt.s32.f32 %v52_v4  ;;  %s743_s2 = smov [#allocation8]  }
  0x3a   :  { %v146_v9 = vsub.f32 %v54_v2, %v68_v5  ;;  %s533_s22 = sshll.u32 %s743_s2, 4  ;;  %s534_s22 = int_to_ptr.vmem [resolvable:$true] %s533_s22 }
  0x3b   :  { %v605_v8 = vpack.c.bf16 %v71_v6, %v68_v5  ;;  %v153_v10 = vsub.f32 %v55_v3, %v71_v6  ;;  %v65_v11 = vsel %vm63_vm1, %v53_v7, 0  ;;  %s707_s23 = scalar_lea.vmem %s534_s22, 128  ;;  %p712_p11 = scmp.lt.s32.totalorder %s534_s22, %s534_s22 }
  0x3c   :  { %v134_v12 = vand.u32 4294901760, %v65_v11  ;;  %v147_v13 = vand.u32 4294901760, %v146_v9  ;;  %p708_p10 = scmp.ne.s32.totalorder %s534_s22, %s707_s23  ;;  %p713_p12 = scmp.lt.s32.totalorder %s707_s23, %s707_s23 }
  0x3d   :  { %615 = vmatpush3.bf16.msra.mxu0 %v605_v8  ;;  %606 = vmatpush3.bf16.msra.mxu1 %v605_v8  ;;  %v154_v14 = vand.u32 4294901760, %v153_v10  ;;  %v611_v25 = vpack.c.bf16 %v153_v10, %v146_v9 }
  0x3e   :  { %v135_v15 = vsub.f32 %v65_v11, %v134_v12  ;;  %607 = vmatprep.subr.bf16.mxu1 %v740_v0  ;;  %616 = vmatprep.subr.bf16.mxu0 %v740_v0  ;;  %v148_v16 = vsub.f32 %v146_v9, %v147_v13  ;;  %p714_p13 = por %p713_p12, %p712_p11 }
  0x3f   :  { %v155_v17 = vsub.f32 %v153_v10, %v154_v14  ;;  %v617_v18 = vpack.c.bf16 %v154_v14, %v147_v13 }
  0x40   :  { %v136_v19 = vand.u32 4294901760, %v135_v15  ;;  %v149_v20 = vand.u32 4294901760, %v148_v16  ;;  %p715_p0 = pnand %p714_p13, %p708_p10 }
  0x41   :  { %v156_v21 = vand.u32 4294901760, %v155_v17 }
  0x42   :  { %588 = vmatmul.mubr.f32.vlgmr.msra.gmra.mrb[0].mxu0 %v136_v19  ;;  %v137_v22 = vsub.f32 %v135_v15, %v136_v19 }
  0x43   :  { %v608_v23 = vpack.c.bf16 %v156_v21, %v149_v20  ;;  %618 = vmatpush3.bf16.msra.mxu0 %v617_v18  ;;  %594 = vmatprep.mubr.msk.f32.mxu0 %vm741_vm0, %v742_v1 }
  0x44   :  { %v138_v24 = vand.u32 4294901760, %v137_v22  ;;  %619 = vmatprep.subr.bf16.mxu0 %v740_v0 }
  0x46   :  { %567 = vmatmul.mubr.f32.vlgmr.msra.gmra.mrb[0].mxu1 %v138_v24 }
  0x47   :  { %609 = vmatpush3.bf16.msra.mxu1 %v608_v23  ;;  %573 = vmatprep.mubr.msk.f32.mxu1 %vm741_vm0, %v742_v1 }
  0x48   :  { %610 = vmatprep.subr.bf16.mxu1 %v740_v0 }
  0x4a   :  { %595 = vmatmul.mubr.f32.vlgmr.msra.gmra.mrb[0].mxu0 %v134_v12 }
  0x4b   :  { %621 = vmatpush3.bf16.msra.mxu0 %v605_v8  ;;  %601 = vmatprep.mubr.msk.f32.mxu0 %vm741_vm0, %v742_v1 }
  0x4e   :  { %574 = vmatmul.mubr.f32.vlgmr.msra.gmra.mrb[0].mxu1 %v134_v12 }
  0x4f   :  { %612 = vmatpush3.bf16.msra.mxu1 %v611_v25  ;;  %580 = vmatprep.mubr.msk.f32.mxu1 %vm741_vm0, %v742_v1 }
  0x52   :  { %602 = vmatmul.mubr.f32.vlgmr.msra.gmra.mrb[0].mxu0 %v134_v12 }
  0x56   :  { %581 = vmatmul.mubr.f32.vlgmr.msra.gmra.mrb[0].mxu1 %v135_v15 }
 0x125   :  { %v522_v26 = vpop.f32.mrb[0].mxu0 }
 0x126   :  { %v603_v27 = vpop.f32.mrb[1].mxu0 }
 0x129   :  { %v297_v29 = vpop.f32.mrb[0].mxu1 }
 0x12a   :  { %v622_v30 = vadd.f32 %v543_v28, %v297_v29  ;;  %v582_v31 = vpop.f32.mrb[1].mxu1 }
 0x12c   :  { %v623_v32 = vadd.f32 %v622_v30, %v522_v26 }
 0x12e   :  { %526 = vst [vmem:[#allocation8] sm:$0xff] %v623_v32 }
 0x12f   :  { %718 = shalt.err (!%p715_p0)
}
 0x130   :  { %s719_s26 = scalar_lea.hbm %s821_s3, 128 }
 0x131   :  { %p720_p1 = scmp.ne.s32.totalorder %s821_s3, %s719_s26  ;;  %p723_p2 = scmp.lt.u32.totalorder %s719_s26, %s821_s3 }
 0x133   :  { %p725_p3 = pnand %p723_p2, %p720_p1 }
 0x135   :  { %728 = shalt.err (!%p725_p3)
}
 0x136   :  { %536 = dma.vmem_to_hbm [thread:$0]  %s534_s22, 128, %s821_s3, [#allocation4]  }
 0x137   :  { %733 = dma.done.wait [#allocation4], 128  }
 0x138   :  { %734 = vsyncadd [#allocation4], 4294967168 }
 0x139   :  { %540 = vsyncpa [#allocation3], 1 }
 0x13a   :  { %541 = vsyncpa [#allocation6], 1 }
 0x13b   :  { %542 = vsyncpa [#allocation4], 1 }

</bundles_post_ra>
